<compile_context>
chip_gen: v7x
topology: tpu7x:2x2x1
jax: 0.10.0
libtpu: 0.0.40
codegen_flags: <defaults>
</compile_context>

<pallas_src>
import functools

import jax
import jax.numpy as jnp
from jax import lax
from jax.experimental import pallas as pl
from jax.experimental.pallas import tpu as pltpu

_LANES = 128
_SUBLANES = 8
_MAX_BLOCK_ROWS = 2048  # 2048 * 128 * 4B = 1 MiB per input buffer


def _hinge_kernel(o_ref, t_ref, out_ref, acc_ref, *,
                  n_valid, block_rows, steps_per_core, needs_mask):
    """One grid step: hinge over a (block_rows, 128) tile, vector-accumulate."""
    s = pl.program_id(1)

    @pl.when(s == 0)
    def _init():
        acc_ref[...] = jnp.zeros_like(acc_ref)

    # Hot path: in-kernel upcast + elementwise mul + hinge clamp (VPU).
    prod = o_ref[...].astype(jnp.float32) * t_ref[...].astype(jnp.float32)
    hinge = jnp.maximum(1.0 - prod, 0.0)

    if needs_mask:
        # Zero out contributions from wrapper padding, Pallas' ragged last
        # block, and any clamped extra step on the second core.
        core = pl.program_id(0)
        row0 = (core * steps_per_core + s) * block_rows
        r = lax.broadcasted_iota(jnp.int32, (block_rows, _LANES), 0)
        c = lax.broadcasted_iota(jnp.int32, (block_rows, _LANES), 1)
        idx = (row0 + r) * _LANES + c
        hinge = jnp.where(idx < n_valid, hinge, 0.0)

    # Fold rows into an (8,128) vreg-shaped running sum — pure VPU adds.
    acc_ref[...] += hinge.reshape(-1, _SUBLANES, _LANES).sum(axis=0)

    @pl.when(s == pl.num_programs(1) - 1)
    def _finalize():
        out_ref[0] = acc_ref[...]  # per-core partial sums, reduced in wrapper


def my_hinge_loss(output, target):
    """JAX wrapper: lane-dense view, large tiles, per-core partial sums."""
    assert output.shape == target.shape, "output/target must have same shape"
    n_valid = output.size

    o_flat = output.reshape(-1)
    t_flat = target.reshape(-1)

    # Pad only up to the next multiple of one vreg (8*128); padded elements
    # are masked inside the kernel, so zero-padding is fine.  For typical
    # feature-map sizes (multiples of 1024) this is a no-op (no extra copy).
    vreg = _SUBLANES * _LANES
    n_view = pl.cdiv(n_valid, vreg) * vreg
    pad = n_view - n_valid
    if pad:
        o_flat = jnp.pad(o_flat, (0, pad))
        t_flat = jnp.pad(t_flat, (0, pad))

    rows = n_view // _LANES                       # multiple of 8
    o2d = o_flat.reshape(rows, _LANES)
    t2d = t_flat.reshape(rows, _LANES)

    block_rows = min(_MAX_BLOCK_ROWS, rows)       # multiple of 8 (or full dim)
    total_blocks = pl.cdiv(rows, block_rows)
    num_cores = 2 if total_blocks >= 2 else 1     # v7x: split across 2 TCs
    steps_per_core = pl.cdiv(total_blocks, num_cores)
    # True iff any swept (core, step) position covers an element >= n_valid.
    needs_mask = (num_cores * steps_per_core * block_rows * _LANES) != n_valid

    last_block = total_blocks - 1

    def in_map(core, s):
        # Clamp so a possible extra step on the second core re-reads a valid
        # block; its contribution is fully masked out inside the kernel.
        return (jnp.minimum(core * steps_per_core + s, last_block), 0)

    kernel = functools.partial(
        _hinge_kernel,
        n_valid=n_valid,
        block_rows=block_rows,
        steps_per_core=steps_per_core,
        needs_mask=needs_mask,
    )

    partials = pl.pallas_call(
        kernel,
        out_shape=jax.ShapeDtypeStruct(
            (num_cores, _SUBLANES, _LANES), jnp.float32),
        grid_spec=pltpu.PrefetchScalarGridSpec(
            num_scalar_prefetch=0,
            grid=(num_cores, steps_per_core),
            in_specs=[
                pl.BlockSpec((block_rows, _LANES), in_map),
                pl.BlockSpec((block_rows, _LANES), in_map),
            ],
            out_specs=pl.BlockSpec(
                (1, _SUBLANES, _LANES), lambda core, s: (core, 0, 0)),
            scratch_shapes=[pltpu.VMEM((_SUBLANES, _LANES), jnp.float32)],
        ),
        compiler_params=pltpu.CompilerParams(
            dimension_semantics=("parallel", "arbitrary")),
    )(o2d, t2d)

    # Single cross-lane/sublane reduction of the tiny partial-sum slab.
    return jnp.sum(partials) / jnp.float32(n_valid)


def _reference(output, target):
    hinge = jnp.maximum(
        1.0 - output.astype(jnp.float32) * target.astype(jnp.float32), 0.0)
    return jnp.mean(hinge)


if __name__ == "__main__":
    key = jax.random.PRNGKey(0)
    k_out, k_tgt = jax.random.split(key)

    # Typical discriminator-output-vs-label shapes for a hinge GAN loss.
    shape = (2, 4, 16, 16)  # NCHW
    output = jax.random.normal(k_out, shape, dtype=jnp.float32)
    # targets in {-1, +1}
    target = jnp.where(
        jax.random.uniform(k_tgt, shape) > 0.5, 1.0, -1.0
    ).astype(jnp.float32)

    loss = jax.block_until_ready(my_hinge_loss(output, target))

    ref = _reference(output, target)
    assert jnp.allclose(loss, ref, rtol=1e-5, atol=1e-6), (loss, ref)

    print("KERNEL_OK")
</pallas_src>

<mosaic_0001>
module attributes {stable_mosaic.version = 11 : i64} {
  func.func @_hinge_kernel(%arg0: i32, %arg1: i32, %arg2: memref<16x128xf32, #tpu.memory_space<vmem>>, %arg3: memref<16x128xf32, #tpu.memory_space<vmem>>, %arg4: memref<1x8x128xf32, #tpu.memory_space<vmem>>, %arg5: memref<8x128xf32, #tpu.memory_space<vmem>>) attributes {dimension_semantics = [#tpu.dimension_semantics<parallel>, #tpu.dimension_semantics<arbitrary>], iteration_bounds = array<i64: 1, 1>, scalar_prefetch = 0 : i64, scratch_operands = 1 : i64, tpu.core_type = #tpu.core_type<tc>, window_params = [{transform_indices = @transform_0, window_bounds = array<i64: 16, 128>}, {transform_indices = @transform_1, window_bounds = array<i64: 16, 128>}, {transform_indices = @transform_2, window_bounds = array<i64: 1, 8, 128>}]} {
    %c0_i32 = arith.constant 0 : i32
    %0 = arith.cmpi eq, %arg1, %c0_i32 : i32
    %1 = arith.extui %0 : i1 to i32
    %c0_i32_0 = arith.constant 0 : i32
    %2 = arith.cmpi ne, %1, %c0_i32_0 : i32
    scf.if %2 {
      %cst_12 = arith.constant 0.000000e+00 : f32
      %18 = vector.broadcast %cst_12 : f32 to vector<8x128xf32>
      %c0_13 = arith.constant 0 : index
      %c0_14 = arith.constant 0 : index
      %19 = vector.load %arg5[%c0_13, %c0_14] : memref<8x128xf32, #tpu.memory_space<vmem>>, vector<8x128xf32>
      tpu.vector_store %arg5[%c0_13, %c0_14], %18 {strides = array<i32>} : memref<8x128xf32, #tpu.memory_space<vmem>>, vector<8x128xf32>,
    } else {
    }
    %c0 = arith.constant 0 : index
    %c0_1 = arith.constant 0 : index
    %3 = vector.load %arg2[%c0, %c0_1] : memref<16x128xf32, #tpu.memory_space<vmem>>, vector<16x128xf32>
    %c0_2 = arith.constant 0 : index
    %c0_3 = arith.constant 0 : index
    %4 = vector.load %arg3[%c0_2, %c0_3] : memref<16x128xf32, #tpu.memory_space<vmem>>, vector<16x128xf32>
    %5 = arith.mulf %3, %4 : vector<16x128xf32>
    %cst = arith.constant 1.000000e+00 : f32
    %6 = vector.broadcast %cst : f32 to vector<16x128xf32>
    %7 = arith.subf %6, %5 : vector<16x128xf32>
    %cst_4 = arith.constant 0.000000e+00 : f32
    %8 = vector.broadcast %cst_4 : f32 to vector<16x128xf32>
    %9 = arith.maximumf %7, %8 : vector<16x128xf32>
    %c0_5 = arith.constant 0 : index
    %c0_6 = arith.constant 0 : index
    %10 = vector.load %arg5[%c0_5, %c0_6] : memref<8x128xf32, #tpu.memory_space<vmem>>, vector<8x128xf32>
    %11 = vector.shape_cast %9 : vector<16x128xf32> to vector<2x8x128xf32>
    %cst_7 = arith.constant dense<0.000000e+00> : vector<8x128xf32>
    %12 = vector.multi_reduction <add>, %11, %cst_7 [0] : vector<2x8x128xf32> to vector<8x128xf32>
    %13 = arith.addf %10, %12 : vector<8x128xf32>
    %c0_8 = arith.constant 0 : index
    %c0_9 = arith.constant 0 : index
    %14 = vector.load %arg5[%c0_8, %c0_9] : memref<8x128xf32, #tpu.memory_space<vmem>>, vector<8x128xf32>
    tpu.vector_store %arg5[%c0_8, %c0_9], %13 {strides = array<i32>} : memref<8x128xf32, #tpu.memory_space<vmem>>, vector<8x128xf32>,
    %c0_i32_10 = arith.constant 0 : i32
    %15 = arith.cmpi eq, %arg1, %c0_i32_10 : i32
    %16 = arith.extui %15 : i1 to i32
    %c0_i32_11 = arith.constant 0 : i32
    %17 = arith.cmpi ne, %16, %c0_i32_11 : i32
    scf.if %17 {
      %c0_12 = arith.constant 0 : index
      %c0_13 = arith.constant 0 : index
      %18 = vector.load %arg5[%c0_12, %c0_13] : memref<8x128xf32, #tpu.memory_space<vmem>>, vector<8x128xf32>
      %c0_14 = arith.constant 0 : index
      %c0_15 = arith.constant 0 : index
      %c0_16 = arith.constant 0 : index
      %19 = vector.load %arg4[%c0_14, %c0_15, %c0_16] : memref<1x8x128xf32, #tpu.memory_space<vmem>>, vector<1x8x128xf32>
      %20 = vector.shape_cast %19 : vector<1x8x128xf32> to vector<8x128xf32>
      %21 = vector.shape_cast %18 : vector<8x128xf32> to vector<1x8x128xf32>
      tpu.vector_store %arg4[%c0_14, %c0_15, %c0_16], %21 {strides = array<i32>} : memref<1x8x128xf32, #tpu.memory_space<vmem>>, vector<1x8x128xf32>,
    } else {
    }
    return
  }
  func.func @transform_0(%arg0: i32, %arg1: i32) -> (i32, i32) {
    %c1_i32 = arith.constant 1 : i32
    %0 = arith.muli %arg0, %c1_i32 : i32
    %1 = arith.addi %0, %arg1 : i32
    %c0_i32 = arith.constant 0 : i32
    %2 = arith.minsi %1, %c0_i32 : i32
    %c0_i32_0 = arith.constant 0 : i32
    %c0_i32_1 = arith.constant 0 : i32
    return %2, %c0_i32_0 : i32, i32
  }
  func.func @transform_1(%arg0: i32, %arg1: i32) -> (i32, i32) {
    %c1_i32 = arith.constant 1 : i32
    %0 = arith.muli %arg0, %c1_i32 : i32
    %1 = arith.addi %0, %arg1 : i32
    %c0_i32 = arith.constant 0 : i32
    %2 = arith.minsi %1, %c0_i32 : i32
    %c0_i32_0 = arith.constant 0 : i32
    %c0_i32_1 = arith.constant 0 : i32
    return %2, %c0_i32_0 : i32, i32
  }
  func.func @transform_2(%arg0: i32, %arg1: i32) -> (i32, i32, i32) {
    %c0_i32 = arith.constant 0 : i32
    %c0_i32_0 = arith.constant 0 : i32
    %c0_i32_1 = arith.constant 0 : i32
    return %arg0, %c0_i32, %c0_i32_0 : i32, i32, i32
  }
}

</mosaic_0001>

<bundles_post_ra>
// kernel: tpu_custom_call.1
= control target key start
LH: loop header
LB: loop body
LE: loop exit
PB: predicated region body
PF: predicated region fallthrough
CT: control target
= control target key end

     0   :  { %7 = vsyncpa [#allocation4], 0  ;;  %s237_s0 = inlined_call_operand.hbm [shape: f32[16,128], index: 0, kind: input, shape index: {}]   ;;  %s238_s1 = inlined_call_operand.hbm [shape: f32[16,128], index: 1, kind: input, shape index: {}]   ;;  %s239_s2 = inlined_call_operand.hbm [shape: f32[1,8,128], index: 2, kind: output, shape index: {}]  }
   0x1   :  { %8 = vsyncpa [#allocation7], 0 }
   0x2   :  { %9 = vsyncpa [#allocation5], 0  ;;  %s181_s9 = smov [#allocation3]   ;;  %s109_s13 = scalar_lea.hbm %s237_s0, 256 }
   0x3   :  { %s21_s10 = sshll.u32 %s181_s9, 4  ;;  %p110_p0 = scmp.ne.s32.totalorder %s237_s0, %s109_s13  ;;  %s22_s10 = int_to_ptr.vmem [resolvable:$true] %s21_s10 }
   0x4   :  { %p113_p1 = scmp.lt.u32.totalorder %s109_s13, %s237_s0 }
   0x6   :  { %p115_p2 = pnand %p113_p1, %p110_p0 }
   0x8   :  { %118 = shalt.err (!%p115_p2)
}
   0x9   :  { %s119_s18 = scalar_lea.vmem %s22_s10, 256  ;;  %p124_p4 = scmp.lt.s32.totalorder %s22_s10, %s22_s10 }
   0xa   :  { %p120_p3 = scmp.ne.s32.totalorder %s22_s10, %s119_s18  ;;  %p125_p5 = scmp.lt.s32.totalorder %s119_s18, %s119_s18 }
   0xc   :  { %p126_p6 = por %p125_p5, %p124_p4 }
   0xe   :  { %p127_p7 = pnand %p126_p6, %p120_p3 }
  0x10   :  { %130 = shalt.err (!%p127_p7)
}
  0x11   :  { %s182_s19 = smov 128   ;;  %s183_s20 = smov 8  }
  0x12   :  { %27 = dma.hbm_to_vmem [thread:$0]  %s237_s0, 256, %s22_s10, [#allocation4], %s182_s19, %s182_s19, %s183_s20  }
  0x13   :  { %s184_s23 = smov [#allocation6]   ;;  %s131_s27 = scalar_lea.hbm %s238_s1, 256 }
  0x14   :  { %s39_s24 = sshll.u32 %s184_s23, 4  ;;  %p132_p8 = scmp.ne.s32.totalorder %s238_s1, %s131_s27  ;;  %s40_s24 = int_to_ptr.vmem [resolvable:$true] %s39_s24 }
  0x15   :  { %p135_p9 = scmp.lt.u32.totalorder %s131_s27, %s238_s1 }
  0x17   :  { %p137_p10 = pnand %p135_p9, %p132_p8 }
  0x19   :  { %140 = shalt.err (!%p137_p10)
}
  0x1a   :  { %s141_s4 = scalar_lea.vmem %s40_s24, 256  ;;  %p146_p12 = scmp.lt.s32.totalorder %s40_s24, %s40_s24 }
  0x1b   :  { %p142_p11 = scmp.ne.s32.totalorder %s40_s24, %s141_s4  ;;  %p147_p13 = scmp.lt.s32.totalorder %s141_s4, %s141_s4 }
  0x1d   :  { %p148_p0 = por %p147_p13, %p146_p12 }
  0x1f   :  { %p149_p1 = pnand %p148_p0, %p142_p11 }
  0x21   :  { %152 = shalt.err (!%p149_p1)
}
  0x22   :  { %45 = dma.hbm_to_vmem [thread:$0]  %s238_s1, 256, %s40_s24, [#allocation7], %s182_s19, %s182_s19, %s183_s20  }
  0x23   :  { %175 = dma.done.wait [#allocation4], 256  }
  0x24   :  { %176 = vsyncadd [#allocation4], 4294967040 }
  0x25   :  { %177 = dma.done.wait [#allocation7], 256  }
  0x26   :  { %178 = vsyncadd [#allocation7], 4294967040  ;;  %v65_v0 = vld [vmem:[#allocation3] sm:$0xff]  ;;  %v66_v1 = vld [vmem:[#allocation3 + $0x8] sm:$0xff]  ;;  %s185_s6 = smov [#allocation8]  }
  0x27   :  { %v67_v2 = vld [vmem:[#allocation6] sm:$0xff]  ;;  %v68_v3 = vld [vmem:[#allocation6 + $0x8] sm:$0xff]  ;;  %s90_s7 = sshll.u32 %s185_s6, 4  ;;  %s91_s7 = int_to_ptr.vmem [resolvable:$true] %s90_s7 }
  0x28   :  { %v69_v4 = vmul.f32 %v67_v2, %v65_v0  ;;  %v70_v5 = vmul.f32 %v68_v3, %v66_v1  ;;  %s153_s1 = scalar_lea.vmem %s91_s7, 128  ;;  %p158_p3 = scmp.lt.s32.totalorder %s91_s7, %s91_s7 }
  0x29   :  { %p154_p2 = scmp.ne.s32.totalorder %s91_s7, %s153_s1  ;;  %p159_p4 = scmp.lt.s32.totalorder %s153_s1, %s153_s1 }
  0x2a   :  { %v71_v6 = vsub.f32 1.0, %v69_v4  ;;  %v72_v7 = vsub.f32 1.0, %v70_v5 }
  0x2b   :  { %p160_p5 = por %p159_p4, %p158_p3 }
  0x2c   :  { %v73_v8 = vmax.f32 %v71_v6, 0.0  ;;  %v74_v9 = vmax.f32 %v72_v7, 0.0 }
  0x2d   :  { %p161_p6 = pnand %p160_p5, %p154_p2 }
  0x2e   :  { %v76_v10 = vadd.f32 %v74_v9, %v73_v8 }
  0x30   :  { %83 = vst [vmem:[#allocation8] sm:$0xff] %v76_v10 }
  0x31   :  { %164 = shalt.err (!%p161_p6)
}
  0x32   :  { %s165_s10 = scalar_lea.hbm %s239_s2, 128 }
  0x33   :  { %p166_p7 = scmp.ne.s32.totalorder %s239_s2, %s165_s10  ;;  %p169_p8 = scmp.lt.u32.totalorder %s165_s10, %s239_s2 }
  0x35   :  { %p171_p9 = pnand %p169_p8, %p166_p7 }
  0x37   :  { %174 = shalt.err (!%p171_p9)
}
  0x38   :  { %93 = dma.vmem_to_hbm [thread:$0]  %s91_s7, 128, %s239_s2, [#allocation5]  }
  0x39   :  { %179 = dma.done.wait [#allocation5], 128  }
  0x3a   :  { %180 = vsyncadd [#allocation5], 4294967168 }
  0x3b   :  { %97 = vsyncpa [#allocation4], 1 }
  0x3c   :  { %98 = vsyncpa [#allocation7], 1 }
  0x3d   :  { %99 = vsyncpa [#allocation5], 1 }

</bundles_post_ra>
